<compile_context>
chip_gen: v7x
topology: tpu7x:2x2x1
jax: 0.10.0
libtpu: 0.0.40
codegen_flags: <defaults>
</compile_context>

<pallas_src>
from functools import partial

import jax
import jax.numpy as jnp
from jax.experimental import pallas as pl
from jax.experimental.pallas import tpu as pltpu


def _style_vectorizer_kernel(x_ref, w_ref, b_ref, o_ref, *, depth, n_sub):
    # x_ref: (block_b, emb)              input rows for this batch tile
    # w_ref: (depth, emb, emb)  bf16     stacked (W * lr_mul)^T  -> compute h @ W^T
    # b_ref: (depth, 1, emb)    f32      biases already scaled by lr_mul
    # o_ref: (block_b, emb)
    block_b = x_ref.shape[0]
    sub = block_b // n_sub

    # --- F.normalize(x, dim=1): x / max(||x||, 1e-12) == x * rsqrt(max(||x||^2, 1e-24))
    # Done per sub-tile so each chain is independent from the start.
    h_bf = []   # bf16 activations (MXU inputs), one per sub-tile
    h_f32 = []  # f32 activations (last-layer output source)
    for s in range(n_sub):
        xs = x_ref[s * sub:(s + 1) * sub, :].astype(jnp.float32)
        sumsq = jnp.sum(xs * xs, axis=1, keepdims=True)
        hs = xs * jax.lax.rsqrt(jnp.maximum(sumsq, 1e-24))
        h_f32.append(hs)
        h_bf.append(hs.astype(jnp.bfloat16))

    # --- depth x (EqualLinear + LeakyReLU(0.2)), statically unrolled.
    # lr_mul is already folded into w_ref / b_ref.  The n_sub chains are
    # independent, letting the scheduler overlap MXU (dot of one sub-tile)
    # with VPU work (bias / leaky-relu / cast of the other).
    for k in range(depth):
        ys = [
            jnp.dot(h_bf[s], w_ref[k], preferred_element_type=jnp.float32) + b_ref[k]
            for s in range(n_sub)
        ]
        h_f32 = [jnp.maximum(y, 0.2 * y) for y in ys]          # leaky ReLU, p=0.2
        h_bf = [h.astype(jnp.bfloat16) for h in h_f32]

    for s in range(n_sub):
        o_ref[s * sub:(s + 1) * sub, :] = h_f32[s].astype(o_ref.dtype)


def _round_up(x, m):
    return ((x + m - 1) // m) * m


def _choose_batch_tiling(B, *, cap=2048, min_steps=2):
    """Pick (block_b, padded_B):
      - block_b multiple of 8, <= cap
      - >= min_steps grid steps when the batch is large enough (v7x megacore)
      - padding limited to the 8-sublane boundary + at most one partial tile
    """
    B8 = _round_up(B, 8)
    if B8 <= 8 * min_steps:                   # tiny batch: single tile
        return B8, B8
    n_steps = max(min_steps, -(-B8 // cap))   # enough steps so each tile <= cap
    block_b = _round_up(-(-B8 // n_steps), 8)
    padded_B = _round_up(B8, block_b)
    return block_b, padded_B


def style_vectorizer(x, weights, biases, lr_mul=0.1, block_b=None):
    """x: (B, emb); weights: (depth, out, in) [PyTorch convention]; biases: (depth, out)."""
    depth, out_dim, in_dim = weights.shape
    B, emb = x.shape
    assert out_dim == in_dim == emb

    # Glue (all trace-time): fold lr_mul into W and b, pre-transpose W so the
    # kernel computes h @ W^T, cast W to bf16 for the MXU.
    w_t = jnp.transpose(weights * lr_mul, (0, 2, 1)).astype(jnp.bfloat16)
    b = (biases.astype(jnp.float32) * lr_mul).reshape(depth, 1, emb)

    if block_b is None:
        block_b, padded_B = _choose_batch_tiling(B)
    else:
        block_b = _round_up(int(block_b), 8)
        padded_B = _round_up(B, block_b)
    x_in = x if padded_B == B else jnp.pad(x, ((0, padded_B - B), (0, 0)))

    # Two interleaved sub-tiles per grid step when the tile is big enough.
    n_sub = 2 if block_b % 16 == 0 else 1

    kernel = partial(_style_vectorizer_kernel, depth=depth, n_sub=n_sub)

    out = pl.pallas_call(
        kernel,
        out_shape=jax.ShapeDtypeStruct((padded_B, emb), x.dtype),
        grid_spec=pltpu.PrefetchScalarGridSpec(
            num_scalar_prefetch=0,
            grid=(padded_B // block_b,),
            in_specs=[
                pl.BlockSpec((block_b, emb), lambda i: (i, 0)),        # batch tile
                pl.BlockSpec((depth, emb, emb), lambda i: (0, 0, 0)),  # weights, VMEM-resident
                pl.BlockSpec((depth, 1, emb), lambda i: (0, 0, 0)),    # biases, VMEM-resident
            ],
            out_specs=pl.BlockSpec((block_b, emb), lambda i: (i, 0)),
        ),
        compiler_params=pltpu.CompilerParams(
            dimension_semantics=("parallel",),  # batch tiles independent (megacore on v7x)
        ),
    )(x_in, w_t, b)
    return out[:B]


def style_vectorizer_ref(x, weights, biases, lr_mul=0.1):
    """Pure-JAX f32 reference mirroring the PyTorch module exactly."""
    x = x.astype(jnp.float32)
    norm = jnp.sqrt(jnp.sum(x * x, axis=1, keepdims=True))
    h = x / jnp.maximum(norm, 1e-12)
    for w, b in zip(weights, biases):
        h = h @ (w * lr_mul).T + b * lr_mul
        h = jnp.where(h >= 0.0, h, 0.2 * h)
    return h


def style_vectorizer_ref_mixed(x, weights, biases, lr_mul=0.1):
    """Pure-JAX reference with the kernel's exact precision recipe
    (lr_mul folded into W before the bf16 cast, bf16 activations between
    layers, f32 accumulation / bias / leaky-relu)."""
    x = x.astype(jnp.float32)
    sumsq = jnp.sum(x * x, axis=1, keepdims=True)
    h = x * jax.lax.rsqrt(jnp.maximum(sumsq, 1e-24))
    w_t = jnp.transpose(weights * lr_mul, (0, 2, 1)).astype(jnp.bfloat16)
    b = biases.astype(jnp.float32) * lr_mul
    hb = h.astype(jnp.bfloat16)
    for k in range(weights.shape[0]):
        y = jnp.dot(hb, w_t[k], preferred_element_type=jnp.float32) + b[k]
        h = jnp.maximum(y, 0.2 * y)
        hb = h.astype(jnp.bfloat16)
    return h


if __name__ == "__main__":
    # StyleVectorizer(emb=128, depth=4, lr_mul=0.1)
    B, emb, depth, lr_mul = 8, 128, 4, 0.1

    key = jax.random.PRNGKey(0)
    kx, kw, kb = jax.random.split(key, 3)
    x = jax.random.normal(kx, (B, emb), dtype=jnp.float32)
    # EqualLinear init: weight ~ N(0, 1) of shape (out, in); bias nonzero here
    # to exercise the bias path.
    weights = jax.random.normal(kw, (depth, emb, emb), dtype=jnp.float32)
    biases = 0.5 * jax.random.normal(kb, (depth, emb), dtype=jnp.float32)

    out = jax.block_until_ready(style_vectorizer(x, weights, biases, lr_mul=lr_mul))
    assert out.shape == (B, emb)

    # Tight check against a precision-matched (bf16-weight/activation) reference.
    ref_mixed = style_vectorizer_ref_mixed(x, weights, biases, lr_mul=lr_mul)
    assert jnp.allclose(out, ref_mixed, atol=2e-3, rtol=2e-3), "mismatch vs bf16 reference"

    # Loose sanity check against the exact f32 PyTorch-equivalent reference.
    ref_f32 = style_vectorizer_ref(x, weights, biases, lr_mul=lr_mul)
    assert jnp.max(jnp.abs(out - ref_f32)) < 3e-2, "too far from f32 reference"

    print("KERNEL_OK")
</pallas_src>

<mosaic_0001>
module attributes {stable_mosaic.version = 11 : i64} {
  func.func @_style_vectorizer_kernel(%arg0: i32, %arg1: memref<8x128xf32, #tpu.memory_space<vmem>>, %arg2: memref<4x128x128xbf16, #tpu.memory_space<vmem>>, %arg3: memref<4x1x128xf32, #tpu.memory_space<vmem>>, %arg4: memref<8x128xf32, #tpu.memory_space<vmem>>) attributes {dimension_semantics = [#tpu.dimension_semantics<parallel>], iteration_bounds = array<i64: 1>, scalar_prefetch = 0 : i64, scratch_operands = 0 : i64, tpu.core_type = #tpu.core_type<tc>, window_params = [{transform_indices = @transform_0, window_bounds = array<i64: 8, 128>}, {pipeline_mode = #tpu.pipeline_mode<synchronous>, transform_indices = @transform_1, window_bounds = array<i64: 4, 128, 128>}, {pipeline_mode = #tpu.pipeline_mode<synchronous>, transform_indices = @transform_2, window_bounds = array<i64: 4, 1, 128>}, {transform_indices = @transform_3, window_bounds = array<i64: 8, 128>}]} {
    %c0 = arith.constant 0 : index
    %c0_0 = arith.constant 0 : index
    %0 = vector.load %arg1[%c0, %c0_0] : memref<8x128xf32, #tpu.memory_space<vmem>>, vector<8x128xf32>
    %1 = arith.mulf %0, %0 : vector<8x128xf32>
    %cst = arith.constant dense<0.000000e+00> : vector<8xf32>
    %2 = vector.multi_reduction <add>, %1, %cst [1] : vector<8x128xf32> to vector<8xf32>
    %3 = vector.shape_cast %2 : vector<8xf32> to vector<8x1xf32>
    %cst_1 = arith.constant 1.000000e-24 : f32
    %4 = vector.broadcast %cst_1 : f32 to vector<8x1xf32>
    %5 = arith.maximumf %3, %4 : vector<8x1xf32>
    %6 = math.rsqrt %5 : vector<8x1xf32>
    %7 = vector.broadcast %6 : vector<8x1xf32> to vector<8x128xf32>
    %8 = arith.mulf %0, %7 : vector<8x128xf32>
    %9 = arith.truncf %8 : vector<8x128xf32> to vector<8x128xbf16>
    %c0_2 = arith.constant 0 : index
    %c0_3 = arith.constant 0 : index
    %c0_4 = arith.constant 0 : index
    %10 = vector.load %arg2[%c0_2, %c0_3, %c0_4] : memref<4x128x128xbf16, #tpu.memory_space<vmem>>, vector<1x128x128xbf16>
    %11 = vector.shape_cast %10 : vector<1x128x128xbf16> to vector<128x128xbf16>
    %cst_5 = arith.constant dense<0.000000e+00> : vector<8x128xf32>
    %12 = tpu.matmul %9, %11, %cst_5 {dimension_numbers = #tpu.dot_dimension_numbers<[1], [0], [0], [1], [0, 0, 1, 1], [], []>} : vector<8x128xbf16>, vector<128x128xbf16>, vector<8x128xf32> -> vector<8x128xf32>
    %c0_6 = arith.constant 0 : index
    %c0_7 = arith.constant 0 : index
    %c0_8 = arith.constant 0 : index
    %13 = vector.load %arg3[%c0_6, %c0_7, %c0_8] : memref<4x1x128xf32, #tpu.memory_space<vmem>>, vector<1x1x128xf32>
    %14 = vector.shape_cast %13 : vector<1x1x128xf32> to vector<1x128xf32>
    %15 = vector.broadcast %14 : vector<1x128xf32> to vector<8x128xf32>
    %16 = arith.addf %12, %15 : vector<8x128xf32>
    %cst_9 = arith.constant 2.000000e-01 : f32
    %17 = vector.broadcast %cst_9 : f32 to vector<8x128xf32>
    %18 = arith.mulf %17, %16 : vector<8x128xf32>
    %19 = arith.maximumf %16, %18 : vector<8x128xf32>
    %20 = arith.truncf %19 : vector<8x128xf32> to vector<8x128xbf16>
    %c1 = arith.constant 1 : index
    %c0_10 = arith.constant 0 : index
    %c0_11 = arith.constant 0 : index
    %21 = vector.load %arg2[%c1, %c0_10, %c0_11] : memref<4x128x128xbf16, #tpu.memory_space<vmem>>, vector<1x128x128xbf16>
    %22 = vector.shape_cast %21 : vector<1x128x128xbf16> to vector<128x128xbf16>
    %cst_12 = arith.constant dense<0.000000e+00> : vector<8x128xf32>
    %23 = tpu.matmul %20, %22, %cst_12 {dimension_numbers = #tpu.dot_dimension_numbers<[1], [0], [0], [1], [0, 0, 1, 1], [], []>} : vector<8x128xbf16>, vector<128x128xbf16>, vector<8x128xf32> -> vector<8x128xf32>
    %c1_13 = arith.constant 1 : index
    %c0_14 = arith.constant 0 : index
    %c0_15 = arith.constant 0 : index
    %24 = vector.load %arg3[%c1_13, %c0_14, %c0_15] : memref<4x1x128xf32, #tpu.memory_space<vmem>>, vector<1x1x128xf32>
    %25 = vector.shape_cast %24 : vector<1x1x128xf32> to vector<1x128xf32>
    %26 = vector.broadcast %25 : vector<1x128xf32> to vector<8x128xf32>
    %27 = arith.addf %23, %26 : vector<8x128xf32>
    %cst_16 = arith.constant 2.000000e-01 : f32
    %28 = vector.broadcast %cst_16 : f32 to vector<8x128xf32>
    %29 = arith.mulf %28, %27 : vector<8x128xf32>
    %30 = arith.maximumf %27, %29 : vector<8x128xf32>
    %31 = arith.truncf %30 : vector<8x128xf32> to vector<8x128xbf16>
    %c2 = arith.constant 2 : index
    %c0_17 = arith.constant 0 : index
    %c0_18 = arith.constant 0 : index
    %32 = vector.load %arg2[%c2, %c0_17, %c0_18] : memref<4x128x128xbf16, #tpu.memory_space<vmem>>, vector<1x128x128xbf16>
    %33 = vector.shape_cast %32 : vector<1x128x128xbf16> to vector<128x128xbf16>
    %cst_19 = arith.constant dense<0.000000e+00> : vector<8x128xf32>
    %34 = tpu.matmul %31, %33, %cst_19 {dimension_numbers = #tpu.dot_dimension_numbers<[1], [0], [0], [1], [0, 0, 1, 1], [], []>} : vector<8x128xbf16>, vector<128x128xbf16>, vector<8x128xf32> -> vector<8x128xf32>
    %c2_20 = arith.constant 2 : index
    %c0_21 = arith.constant 0 : index
    %c0_22 = arith.constant 0 : index
    %35 = vector.load %arg3[%c2_20, %c0_21, %c0_22] : memref<4x1x128xf32, #tpu.memory_space<vmem>>, vector<1x1x128xf32>
    %36 = vector.shape_cast %35 : vector<1x1x128xf32> to vector<1x128xf32>
    %37 = vector.broadcast %36 : vector<1x128xf32> to vector<8x128xf32>
    %38 = arith.addf %34, %37 : vector<8x128xf32>
    %cst_23 = arith.constant 2.000000e-01 : f32
    %39 = vector.broadcast %cst_23 : f32 to vector<8x128xf32>
    %40 = arith.mulf %39, %38 : vector<8x128xf32>
    %41 = arith.maximumf %38, %40 : vector<8x128xf32>
    %42 = arith.truncf %41 : vector<8x128xf32> to vector<8x128xbf16>
    %c3 = arith.constant 3 : index
    %c0_24 = arith.constant 0 : index
    %c0_25 = arith.constant 0 : index
    %43 = vector.load %arg2[%c3, %c0_24, %c0_25] : memref<4x128x128xbf16, #tpu.memory_space<vmem>>, vector<1x128x128xbf16>
    %44 = vector.shape_cast %43 : vector<1x128x128xbf16> to vector<128x128xbf16>
    %cst_26 = arith.constant dense<0.000000e+00> : vector<8x128xf32>
    %45 = tpu.matmul %42, %44, %cst_26 {dimension_numbers = #tpu.dot_dimension_numbers<[1], [0], [0], [1], [0, 0, 1, 1], [], []>} : vector<8x128xbf16>, vector<128x128xbf16>, vector<8x128xf32> -> vector<8x128xf32>
    %c3_27 = arith.constant 3 : index
    %c0_28 = arith.constant 0 : index
    %c0_29 = arith.constant 0 : index
    %46 = vector.load %arg3[%c3_27, %c0_28, %c0_29] : memref<4x1x128xf32, #tpu.memory_space<vmem>>, vector<1x1x128xf32>
    %47 = vector.shape_cast %46 : vector<1x1x128xf32> to vector<1x128xf32>
    %48 = vector.broadcast %47 : vector<1x128xf32> to vector<8x128xf32>
    %49 = arith.addf %45, %48 : vector<8x128xf32>
    %cst_30 = arith.constant 2.000000e-01 : f32
    %50 = vector.broadcast %cst_30 : f32 to vector<8x128xf32>
    %51 = arith.mulf %50, %49 : vector<8x128xf32>
    %52 = arith.maximumf %49, %51 : vector<8x128xf32>
    %c0_31 = arith.constant 0 : index
    %c0_32 = arith.constant 0 : index
    %53 = vector.load %arg4[%c0_31, %c0_32] : memref<8x128xf32, #tpu.memory_space<vmem>>, vector<8x128xf32>
    tpu.vector_store %arg4[%c0_31, %c0_32], %52 {strides = array<i32>} : memref<8x128xf32, #tpu.memory_space<vmem>>, vector<8x128xf32>,
    return
  }
  func.func @transform_0(%arg0: i32) -> (i32, i32) {
    %c0_i32 = arith.constant 0 : i32
    %c0_i32_0 = arith.constant 0 : i32
    return %arg0, %c0_i32 : i32, i32
  }
  func.func @transform_1(%arg0: i32) -> (i32, i32, i32) {
    %c0_i32 = arith.constant 0 : i32
    %c0_i32_0 = arith.constant 0 : i32
    %c0_i32_1 = arith.constant 0 : i32
    %c0_i32_2 = arith.constant 0 : i32
    return %c0_i32, %c0_i32_0, %c0_i32_1 : i32, i32, i32
  }
  func.func @transform_2(%arg0: i32) -> (i32, i32, i32) {
    %c0_i32 = arith.constant 0 : i32
    %c0_i32_0 = arith.constant 0 : i32
    %c0_i32_1 = arith.constant 0 : i32
    %c0_i32_2 = arith.constant 0 : i32
    return %c0_i32, %c0_i32_0, %c0_i32_1 : i32, i32, i32
  }
  func.func @transform_3(%arg0: i32) -> (i32, i32) {
    %c0_i32 = arith.constant 0 : i32
    %c0_i32_0 = arith.constant 0 : i32
    return %arg0, %c0_i32 : i32, i32
  }
}

</mosaic_0001>

<bundles_post_ra>
// kernel: tpu_custom_call.1
= control target key start
LH: loop header
LB: loop body
LE: loop exit
PB: predicated region body
PF: predicated region fallthrough
CT: control target
= control target key end

     0   :  { %8 = vsyncpa [#allocation3], 0  ;;  %s918_s0 = inlined_call_operand.hbm [shape: f32[8,128], index: 0, kind: input, shape index: {}]   ;;  %s919_s1 = inlined_call_operand.hbm [shape: bf16[4,128,128], index: 1, kind: input, shape index: {}]   ;;  %s920_s2 = inlined_call_operand.vmem [shape: f32[4,1,128], index: 2, kind: input, shape index: {}]   ;;  %s921_s3 = inlined_call_operand.hbm [shape: f32[8,128], index: 3, kind: output, shape index: {}]  }
   0x1   :  { %9 = vsyncpa [#allocation6], 0 }
   0x2   :  { %10 = vsyncpa [#allocation4], 0  ;;  %s796_s12 = smov [#allocation2]   ;;  %s797_s14 = smov [#allocation5]  }
   0x3   :  { %s17_s13 = sshll.u32 %s796_s12, 4  ;;  %s26_s15 = sshll.u32 %s797_s14, 4  ;;  %s18_s13 = int_to_ptr.vmem [resolvable:$true] %s17_s13  ;;  %s823_s15 = int_to_ptr.vmem [resolvable:$true] %s26_s15 }
   0x4   :  { %s724_s18 = scalar_lea.hbm %s918_s0, 128 }
   0x5   :  { %p725_p0 = scmp.ne.s32.totalorder %s918_s0, %s724_s18  ;;  %p728_p1 = scmp.lt.u32.totalorder %s724_s18, %s918_s0 }
   0x7   :  { %p730_p2 = pnand %p728_p1, %p725_p0 }
   0x9   :  { %733 = shalt.err (!%p730_p2)
}
   0xa   :  { %s734_s23 = scalar_lea.vmem %s18_s13, 128  ;;  %p739_p4 = scmp.lt.s32.totalorder %s18_s13, %s18_s13 }
   0xb   :  { %p735_p3 = scmp.ne.s32.totalorder %s18_s13, %s734_s23  ;;  %p740_p5 = scmp.lt.s32.totalorder %s734_s23, %s734_s23 }
   0xd   :  { %p741_p6 = por %p740_p5, %p739_p4 }
   0xf   :  { %p742_p7 = pnand %p741_p6, %p735_p3 }
  0x11   :  { %745 = shalt.err (!%p742_p7)
}
  0x12   :  { %20 = dma.hbm_to_vmem [thread:$0]  %s918_s0, 128, %s18_s13, [#allocation3]  }
  0x13   :  { %s746_s28 = scalar_lea.hbm %s919_s1, 4096 }
  0x14   :  { %p747_p8 = scmp.ne.s32.totalorder %s919_s1, %s746_s28  ;;  %p750_p9 = scmp.lt.u32.totalorder %s746_s28, %s919_s1 }
  0x16   :  { %p752_p10 = pnand %p750_p9, %p747_p8 }
  0x18   :  { %755 = shalt.err (!%p752_p10)
}
  0x19   :  { %s756_s6 = scalar_lea.vmem %s823_s15, 4096  ;;  %p761_p12 = scmp.lt.s32.totalorder %s823_s15, %s823_s15 }
  0x1a   :  { %p757_p11 = scmp.ne.s32.totalorder %s823_s15, %s756_s6  ;;  %p762_p13 = scmp.lt.s32.totalorder %s756_s6, %s756_s6 }
  0x1c   :  { %p763_p0 = por %p762_p13, %p761_p12 }
  0x1e   :  { %p764_p1 = pnand %p763_p0, %p757_p11 }
  0x20   :  { %767 = shalt.err (!%p764_p1)
}
  0x21   :  { %s798_s0 = smov 64   ;;  %s799_s7 = smov 4  }
  0x22   :  { %32 = dma.hbm_to_vmem [thread:$0]  %s919_s1, 4096, %s823_s15, [#allocation6], %s798_s0, %s798_s0, %s799_s7  }
  0x23   :  { %790 = dma.done.wait [#allocation3], 128  }
  0x24   :  { %791 = vsyncadd [#allocation3], 4294967168 }
  0x25   :  { %792 = dma.done.wait [#allocation6], 4096  }
  0x26   :  { %793 = vsyncadd [#allocation6], 4294963200  ;;  %v800_v0 = vmov 0.0   ;;  %v42_v1 = vld [vmem:[#allocation2] sm:$0xff]  ;;  %v690_v3 = vld [vmem:[#allocation5] sm:$0xff]   ;;  %vm801_vm0 = vmmov 0  }
  0x27   :  { %603 = vmatprep.subr.bf16.mxu0 %v800_v0  ;;  %623 = vmatprep.subr.bf16.mxu1 %v800_v0  ;;  %v43_v2 = vmul.f32 %v42_v1, %v42_v1  ;;  %v691_v4 = vld [vmem:[#allocation5 + $0x8] sm:$0xff]   ;;  %v692_v5 = vld [vmem:[#allocation5 + $0x10] sm:$0xff]   ;;  %v693_v6 = vld [vmem:[#allocation5 + $0x18] sm:$0xff]   ;;  %s802_s17 = smov [#allocation7]  }
  0x28   :  { %604 = vmatpush3.bf16.msra.mxu0 %v690_v3  ;;  %v694_v7 = vld [vmem:[#allocation5 + $0x20] sm:$0xff]   ;;  %v695_v8 = vld [vmem:[#allocation5 + $0x28] sm:$0xff]   ;;  %619 = vmatprep.mubr.msk.bf16.mxu0 %vm801_vm0, %v800_v0  ;;  %v696_v9 = vld [vmem:[#allocation5 + $0x30] sm:$0xff]   ;;  %s518_s18 = sshll.u32 %s802_s17, 4  ;;  %s519_s18 = int_to_ptr.vmem [resolvable:$true] %s518_s18 }
  0x29   :  { %44 = vadd.xlane.f32.xlu0 %v43_v2  ;;  %605 = vmatprep.subr.bf16.mxu0 %v800_v0  ;;  %v697_v10 = vld [vmem:[#allocation5 + $0x38] sm:$0xff]   ;;  %v698_v11 = vld [vmem:[#allocation5 + $0x40] sm:$0xff]   ;;  %v699_v12 = vld [vmem:[#allocation5 + $0x48] sm:$0xff]   ;;  %s768_s19 = scalar_lea.vmem %s519_s18, 128  ;;  %p773_p3 = scmp.lt.s32.totalorder %s519_s18, %s519_s18 }
  0x2a   :  { %639 = vmatprep.mubr.msk.bf16.mxu1 %vm801_vm0, %v800_v0  ;;  %624 = vmatpush3.bf16.msra.mxu1 %v698_v11  ;;  %v700_v13 = vld [vmem:[#allocation5 + $0x50] sm:$0xff]   ;;  %v701_v14 = vld [vmem:[#allocation5 + $0x58] sm:$0xff]   ;;  %v702_v15 = vld [vmem:[#allocation5 + $0x60] sm:$0xff]   ;;  %p769_p2 = scmp.ne.s32.totalorder %s519_s18, %s768_s19  ;;  %p774_p4 = scmp.lt.s32.totalorder %s768_s19, %s768_s19 }
  0x2b   :  { %625 = vmatprep.subr.bf16.mxu1 %v800_v0  ;;  %v703_v16 = vld [vmem:[#allocation5 + $0x68] sm:$0xff]   ;;  %v704_v22 = vld [vmem:[#allocation5 + $0x70] sm:$0xff]   ;;  %v705_v23 = vld [vmem:[#allocation5 + $0x78] sm:$0xff]  }
  0x2c   :  { %606 = vmatpush3.bf16.msra.mxu0 %v691_v4  ;;  %v706_v24 = vld [vmem:[#allocation5 + $0x80] sm:$0xff]   ;;  %v707_v25 = vld [vmem:[#allocation5 + $0x88] sm:$0xff]   ;;  %v708_v26 = vld [vmem:[#allocation5 + $0x90] sm:$0xff]   ;;  %p775_p5 = por %p774_p4, %p773_p3 }
  0x2d   :  { %607 = vmatprep.subr.bf16.mxu0 %v800_v0  ;;  %v709_v27 = vld [vmem:[#allocation5 + $0x98] sm:$0xff]   ;;  %v710_v28 = vld [vmem:[#allocation5 + $0xa0] sm:$0xff]   ;;  %v711_v29 = vld [vmem:[#allocation5 + $0xa8] sm:$0xff]  }
  0x2e   :  { %626 = vmatpush3.bf16.msra.mxu1 %v699_v12  ;;  %v528_v30 = vld [vmem:[%s920_s2] ss:$0 sm:$0xff]  ;;  %v712_v39 = vld [vmem:[#allocation5 + $0xb0] sm:$0xff]   ;;  %v714_v41 = vld [vmem:[#allocation5 + $0xc0] sm:$0xff]   ;;  %p776_p6 = pnand %p775_p5, %p769_p2 }
  0x2f   :  { %627 = vmatprep.subr.bf16.mxu1 %v800_v0  ;;  %v713_v40 = vld [vmem:[#allocation5 + $0xb8] sm:$0xff]   ;;  %v715_v42 = vld [vmem:[#allocation5 + $0xc8] sm:$0xff]   ;;  %v716_v43 = vld [vmem:[#allocation5 + $0xd0] sm:$0xff]  }
  0x30   :  { %608 = vmatpush3.bf16.msra.mxu0 %v692_v5  ;;  %v717_v44 = vld [vmem:[#allocation5 + $0xd8] sm:$0xff]   ;;  %v718_v45 = vld [vmem:[#allocation5 + $0xe0] sm:$0xff]   ;;  %v719_v46 = vld [vmem:[#allocation5 + $0xe8] sm:$0xff]  }
  0x31   :  { %609 = vmatprep.subr.bf16.mxu0 %v800_v0  ;;  %v538_v47 = vld [vmem:[%s920_s2 + $0x1] ss:$0 sm:$0xff]  ;;  %v720_v56 = vld [vmem:[#allocation5 + $0xf0] sm:$0xff]   ;;  %v548_v58 = vld [vmem:[%s920_s2 + $0x2] ss:$0 sm:$0xff] }
  0x32   :  { %628 = vmatpush3.bf16.msra.mxu1 %v700_v13  ;;  %v721_v57 = vld [vmem:[#allocation5 + $0xf8] sm:$0xff]  }
  0x33   :  { %629 = vmatprep.subr.bf16.mxu1 %v800_v0  ;;  %v558_v4 = vld [vmem:[%s920_s2 + $0x3] ss:$0 sm:$0xff] }
  0x34   :  { %610 = vmatpush3.bf16.msra.mxu0 %v693_v6 }
  0x35   :  { %611 = vmatprep.subr.bf16.mxu0 %v800_v0 }
  0x36   :  { %630 = vmatpush3.bf16.msra.mxu1 %v701_v14 }
  0x37   :  { %631 = vmatprep.subr.bf16.mxu1 %v800_v0 }
  0x38   :  { %612 = vmatpush3.bf16.msra.mxu0 %v694_v7 }
  0x39   :  { %613 = vmatprep.subr.bf16.mxu0 %v800_v0 }
  0x3a   :  { %632 = vmatpush3.bf16.msra.mxu1 %v702_v15 }
  0x3b   :  { %633 = vmatprep.subr.bf16.mxu1 %v800_v0 }
  0x3c   :  { %614 = vmatpush3.bf16.msra.mxu0 %v695_v8 }
  0x3d   :  { %615 = vmatprep.subr.bf16.mxu0 %v800_v0 }
  0x3e   :  { %634 = vmatpush3.bf16.msra.mxu1 %v703_v16 }
  0x3f   :  { %635 = vmatprep.subr.bf16.mxu1 %v800_v0 }
  0x40   :  { %616 = vmatpush3.bf16.msra.mxu0 %v696_v9 }
  0x41   :  { %617 = vmatprep.subr.bf16.mxu0 %v800_v0 }
  0x42   :  { %636 = vmatpush3.bf16.msra.mxu1 %v704_v22 }
  0x43   :  { %637 = vmatprep.subr.bf16.mxu1 %v800_v0 }
  0x44   :  { %618 = vmatpush3.bf16.msra.mxu0 %v697_v10 }
  0x45   :  { %643 = vmatprep.subr.bf16.mxu0 %v800_v0 }
  0x46   :  { %638 = vmatpush3.bf16.msra.mxu1 %v705_v23 }
  0x47   :  { %663 = vmatprep.subr.bf16.mxu1 %v800_v0 }
  0xb6   :  { %v45_v17 = vpop.xlane.xlu0 %44 }
  0xb7   :  { %v46_v18 = vmax.f32 %v45_v17, 1e-24 }
  0xb9   :  { %722 = vrsqrt.f32 %v46_v18 }
  0xc3   :  { %v723_v19 = vpop.eup %722 }
  0xc4   :  { %v48_v20 = vmul.f32 %v723_v19, %v42_v1 }
  0xc6   :  { %v49_v21 = vpack.c.bf16 %v48_v20, %v48_v20 }
  0xc8   :  { %620 = vmatmul.mubr.bf16.vlgmr.msra.gmra.mrb[0].mxu0 %v49_v21 }
  0xc9   :  { %659 = vmatprep.mubr.msk.bf16.mxu0 %vm801_vm0, %v800_v0  ;;  %644 = vmatpush3.bf16.msra.mxu0 %v706_v24 }
  0xca   :  { %645 = vmatprep.subr.bf16.mxu0 %v800_v0 }
  0xcd   :  { %646 = vmatpush3.bf16.msra.mxu0 %v707_v25 }
  0xce   :  { %647 = vmatprep.subr.bf16.mxu0 %v800_v0 }
  0xd1   :  { %648 = vmatpush3.bf16.msra.mxu0 %v708_v26 }
  0xd2   :  { %649 = vmatprep.subr.bf16.mxu0 %v800_v0 }
  0xd5   :  { %650 = vmatpush3.bf16.msra.mxu0 %v709_v27 }
  0xd6   :  { %651 = vmatprep.subr.bf16.mxu0 %v800_v0 }
  0xd9   :  { %652 = vmatpush3.bf16.msra.mxu0 %v710_v28 }
  0xda   :  { %653 = vmatprep.subr.bf16.mxu0 %v800_v0 }
  0xdd   :  { %654 = vmatpush3.bf16.msra.mxu0 %v711_v29 }
  0xde   :  { %655 = vmatprep.subr.bf16.mxu0 %v800_v0 }
  0xe1   :  { %656 = vmatpush3.bf16.msra.mxu0 %v712_v39 }
  0xe2   :  { %657 = vmatprep.subr.bf16.mxu0 %v800_v0 }
  0xe5   :  { %658 = vmatpush3.bf16.msra.mxu0 %v713_v40 }
 0x19b   :  { %v155_v31 = vpop.f32.mrb[0].mxu0 }
 0x19c   :  { %v156_v32 = vadd.f32 %v528_v30, %v155_v31  ;;  %v621_v33 = vpop.f32.mrb[1].mxu0 }
 0x19d   :  { %v158_v34 = vpop.f32.mrb[2].mxu0 }
 0x19e   :  { %v161_v35 = vmul.f32 0.2, %v156_v32  ;;  %v622_v36 = vpop.f32.mrb[3].mxu0 }
 0x1a0   :  { %v162_v37 = vmax.f32 %v156_v32, %v161_v35 }
 0x1a2   :  { %v163_v38 = vpack.c.bf16 %v162_v37, %v162_v37 }
 0x1a4   :  { %640 = vmatmul.mubr.bf16.vlgmr.msra.gmra.mrb[0].mxu1 %v163_v38 }
 0x1a5   :  { %679 = vmatprep.mubr.msk.bf16.mxu1 %vm801_vm0, %v800_v0  ;;  %664 = vmatpush3.bf16.msra.mxu1 %v714_v41 }
 0x1a6   :  { %665 = vmatprep.subr.bf16.mxu1 %v800_v0 }
 0x1a9   :  { %666 = vmatpush3.bf16.msra.mxu1 %v715_v42 }
 0x1aa   :  { %667 = vmatprep.subr.bf16.mxu1 %v800_v0 }
 0x1ad   :  { %668 = vmatpush3.bf16.msra.mxu1 %v716_v43 }
 0x1ae   :  { %669 = vmatprep.subr.bf16.mxu1 %v800_v0 }
 0x1b1   :  { %670 = vmatpush3.bf16.msra.mxu1 %v717_v44 }
 0x1b2   :  { %671 = vmatprep.subr.bf16.mxu1 %v800_v0 }
 0x1b5   :  { %672 = vmatpush3.bf16.msra.mxu1 %v718_v45 }
 0x1b6   :  { %673 = vmatprep.subr.bf16.mxu1 %v800_v0 }
 0x1b9   :  { %674 = vmatpush3.bf16.msra.mxu1 %v719_v46 }
 0x1ba   :  { %675 = vmatprep.subr.bf16.mxu1 %v800_v0 }
 0x1bd   :  { %676 = vmatpush3.bf16.msra.mxu1 %v720_v56 }
 0x1be   :  { %677 = vmatprep.subr.bf16.mxu1 %v800_v0 }
 0x1c1   :  { %678 = vmatpush3.bf16.msra.mxu1 %v721_v57 }
 0x277   :  { %v271_v48 = vpop.f32.mrb[0].mxu1 }
 0x278   :  { %v272_v49 = vadd.f32 %v538_v47, %v271_v48  ;;  %v641_v50 = vpop.f32.mrb[1].mxu1 }
 0x279   :  { %v274_v51 = vpop.f32.mrb[2].mxu1 }
 0x27a   :  { %v277_v52 = vmul.f32 0.2, %v272_v49  ;;  %v642_v53 = vpop.f32.mrb[3].mxu1 }
 0x27c   :  { %v278_v54 = vmax.f32 %v272_v49, %v277_v52 }
 0x27e   :  { %v279_v55 = vpack.c.bf16 %v278_v54, %v278_v54 }
 0x280   :  { %660 = vmatmul.mubr.bf16.vlgmr.msra.gmra.mrb[4].mxu0 %v279_v55 }
 0x353   :  { %v387_v59 = vpop.f32.mrb[4].mxu0 }
 0x354   :  { %v388_v60 = vadd.f32 %v548_v58, %v387_v59  ;;  %v661_v61 = vpop.f32.mrb[5].mxu0 }
 0x355   :  { %v390_v62 = vpop.f32.mrb[6].mxu0 }
 0x356   :  { %v393_v63 = vmul.f32 0.2, %v388_v60  ;;  %v662_v1 = vpop.f32.mrb[7].mxu0 }
 0x358   :  { %v394_v2 = vmax.f32 %v388_v60, %v393_v63 }
 0x35a   :  { %v395_v3 = vpack.c.bf16 %v394_v2, %v394_v2 }
 0x35c   :  { %680 = vmatmul.mubr.bf16.vlgmr.msra.gmra.mrb[4].mxu1 %v395_v3 }
 0x42f   :  { %v503_v0 = vpop.f32.mrb[4].mxu1 }
 0x430   :  { %v504_v5 = vadd.f32 %v558_v4, %v503_v0  ;;  %v681_v6 = vpop.f32.mrb[5].mxu1 }
 0x431   :  { %v506_v7 = vpop.f32.mrb[6].mxu1 }
 0x432   :  { %v509_v8 = vmul.f32 0.2, %v504_v5  ;;  %v682_v9 = vpop.f32.mrb[7].mxu1 }
 0x434   :  { %v510_v10 = vmax.f32 %v504_v5, %v509_v8 }
 0x436   :  { %511 = vst [vmem:[#allocation7] sm:$0xff] %v510_v10 }
 0x437   :  { %779 = shalt.err (!%p776_p6)
}
 0x438   :  { %s780_s21 = scalar_lea.hbm %s921_s3, 128 }
 0x439   :  { %p781_p7 = scmp.ne.s32.totalorder %s921_s3, %s780_s21  ;;  %p784_p8 = scmp.lt.u32.totalorder %s780_s21, %s921_s3 }
 0x43b   :  { %p786_p9 = pnand %p784_p8, %p781_p7 }
 0x43d   :  { %789 = shalt.err (!%p786_p9)
}
 0x43e   :  { %521 = dma.vmem_to_hbm [thread:$0]  %s519_s18, 128, %s921_s3, [#allocation4]  }
 0x43f   :  { %794 = dma.done.wait [#allocation4], 128  }
 0x440   :  { %795 = vsyncadd [#allocation4], 4294967168 }
 0x441   :  { %525 = vsyncpa [#allocation3], 1 }
 0x442   :  { %526 = vsyncpa [#allocation6], 1 }
 0x443   :  { %527 = vsyncpa [#allocation4], 1 }

</bundles_post_ra>
